<compile_context>
chip_gen: v6e
topology: v6e:2x2x1
jax: 0.10.0
libtpu: 0.0.40
codegen_flags: <defaults>
</compile_context>

<pallas_src>
import math
from functools import partial

import jax
import jax.numpy as jnp
from jax.experimental import pallas as pl
from jax.experimental.pallas import tpu as pltpu


# ----------------------------------------------------------------------------
# small helpers
# ----------------------------------------------------------------------------

def _round_up(x, m):
    return (x + m - 1) // m * m


def _pick_tile(total, cap, base):
    """Largest multiple of `base` that divides `total` (itself a multiple of
    base) and is <= max(cap, base)."""
    t = min(total, max(base, (cap // base) * base))
    t = max(base, (t // base) * base)
    while total % t:
        t -= base
    return int(t)


def _pad_to(a, shape):
    pads = [(0, s - d) for d, s in zip(a.shape, shape)]
    if all(p == (0, 0) for p in pads):
        return a
    return jnp.pad(a, pads)


def _activate(y, act):
    if act == "none":
        return y
    if act == "silu":
        return y * jax.nn.sigmoid(y)
    if act == "mish":
        return y * jnp.tanh(jax.nn.softplus(y))
    if act == "gelu_tanh":
        return jax.nn.gelu(y, approximate=True)
    raise ValueError(act)


# ----------------------------------------------------------------------------
# tiled linear kernel (optionally fused:  y = res + gate * (mask * act(xW+b)) )
# ----------------------------------------------------------------------------

def _linear_kernel(*refs, act, has_bias, has_mask, has_gate, has_res):
    i = 0
    x_ref = refs[i]; i += 1                      # (tt, tk)
    w_ref = refs[i]; i += 1                      # (tk, tn) bf16
    b_ref = refs[i] if has_bias else None; i += int(has_bias)   # (1, tn)
    m_ref = refs[i] if has_mask else None; i += int(has_mask)   # (tt, 1)
    g_ref = refs[i] if has_gate else None; i += int(has_gate)   # (1, tn)
    r_ref = refs[i] if has_res else None; i += int(has_res)     # (tt, tn)
    o_ref = refs[i]; i += 1                      # (tt, tn)
    acc_ref = refs[i]                            # (tt, tn) f32 scratch

    kk = pl.program_id(3)

    @pl.when(kk == 0)
    def _():
        acc_ref[...] = jnp.zeros_like(acc_ref)

    acc_ref[...] += jnp.dot(x_ref[...].astype(jnp.bfloat16), w_ref[...],
                            preferred_element_type=jnp.float32)

    @pl.when(kk == pl.num_programs(3) - 1)
    def _():
        y = acc_ref[...]
        if has_bias:
            y = y + b_ref[...]
        y = _activate(y, act)
        if has_mask:
            y = y * m_ref[...]
        if has_gate:
            y = y * g_ref[...]
        if has_res:
            y = y + r_ref[...]
        o_ref[...] = y.astype(o_ref.dtype)


def make_linear_params(w, b=None):
    """w: (N, K) PyTorch layout.  Store transposed (K,N), padded to 128, bf16."""
    N, K = w.shape
    Kp, Np = _round_up(K, 128), _round_up(N, 128)
    wt = jnp.zeros((Kp, Np), jnp.float32)
    wt = wt.at[:K, :N].set(jnp.asarray(w, jnp.float32).T).astype(jnp.bfloat16)
    bp = None
    if b is not None:
        bp = jnp.zeros((1, Np), jnp.float32)
        bp = bp.at[:, :N].set(jnp.asarray(b, jnp.float32).reshape(1, N))
    return {"w": wt, "b": bp, "n": int(N), "k": int(K)}


def pallas_linear3(x, lp, *, act="none", gate=None, residual=None, rowmask=None,
                   out_dtype=jnp.bfloat16, tt_cap=256, tn_cap=512, tk_cap=512):
    """x: (B, T, K).  Returns (B, T, N) = res + gate * (mask * act(x @ W + b))."""
    B, T, K = x.shape
    wt, bp, N = lp["w"], lp["b"], lp["n"]
    Kp, Np = wt.shape
    assert K == lp["k"], (K, lp["k"])

    Tp = _round_up(T, 8)
    tt = _pick_tile(Tp, tt_cap, 8)
    tn = _pick_tile(Np, tn_cap, 128)
    tk = _pick_tile(Kp, tk_cap, 128)

    xp = _pad_to(x, (B, Tp, Kp))

    has_bias = bp is not None
    has_mask = rowmask is not None
    has_gate = gate is not None
    has_res = residual is not None

    inputs = [xp, wt]
    in_specs = [
        pl.BlockSpec((None, tt, tk), lambda b, i, j, k: (b, i, k)),
        pl.BlockSpec((tk, tn), lambda b, i, j, k: (k, j)),
    ]
    if has_bias:
        inputs.append(bp)
        in_specs.append(pl.BlockSpec((1, tn), lambda b, i, j, k: (0, j)))
    if has_mask:
        mp = _pad_to(rowmask.astype(jnp.float32).reshape(B, T, 1), (B, Tp, 1))
        inputs.append(mp)
        in_specs.append(pl.BlockSpec((None, tt, 1), lambda b, i, j, k: (b, i, 0)))
    if has_gate:
        gp = jnp.zeros((B, 1, Np), jnp.float32)
        gp = gp.at[:, :, :N].set(gate.astype(jnp.float32).reshape(B, 1, N))
        inputs.append(gp)
        in_specs.append(pl.BlockSpec((None, 1, tn), lambda b, i, j, k: (b, 0, j)))
    if has_res:
        rp = _pad_to(residual.astype(jnp.float32), (B, Tp, Np))
        inputs.append(rp)
        in_specs.append(pl.BlockSpec((None, tt, tn), lambda b, i, j, k: (b, i, j)))

    out = pl.pallas_call(
        partial(_linear_kernel, act=act, has_bias=has_bias, has_mask=has_mask,
                has_gate=has_gate, has_res=has_res),
        out_shape=jax.ShapeDtypeStruct((B, Tp, Np), out_dtype),
        grid=(B, Tp // tt, Np // tn, Kp // tk),
        in_specs=in_specs,
        out_specs=pl.BlockSpec((None, tt, tn), lambda b, i, j, k: (b, i, j)),
        scratch_shapes=[pltpu.VMEM((tt, tn), jnp.float32)],
        compiler_params=pltpu.CompilerParams(
            dimension_semantics=("parallel", "parallel", "parallel", "arbitrary")),
    )(*inputs)
    return out[:, :T, :N]


def pallas_linear2(x2d, lp, **kw):
    M, K = x2d.shape
    return pallas_linear3(x2d.reshape(1, M, K), lp, **kw)[0]


# ----------------------------------------------------------------------------
# modulated layernorm:  LN(x) * (1 + scale) + shift
# ----------------------------------------------------------------------------

def _mod_ln_kernel(x_ref, sc_ref, sh_ref, o_ref, *, eps):
    x = x_ref[...].astype(jnp.float32)           # (tt, D)
    mu = jnp.mean(x, axis=-1, keepdims=True)
    xc = x - mu
    var = jnp.mean(xc * xc, axis=-1, keepdims=True)
    xn = xc * jax.lax.rsqrt(var + eps)
    o_ref[...] = (xn * (1.0 + sc_ref[...]) + sh_ref[...]).astype(o_ref.dtype)


def pallas_modulated_layernorm(x, scale, shift, eps=1e-6,
                               out_dtype=jnp.bfloat16, tt_cap=256):
    B, T, D = x.shape
    Tp = _round_up(T, 8)
    tt = _pick_tile(Tp, tt_cap, 8)
    xp = _pad_to(x.astype(jnp.float32), (B, Tp, D))
    sc3 = scale.astype(jnp.float32).reshape(B, 1, D)
    sh3 = shift.astype(jnp.float32).reshape(B, 1, D)
    out = pl.pallas_call(
        partial(_mod_ln_kernel, eps=eps),
        out_shape=jax.ShapeDtypeStruct((B, Tp, D), out_dtype),
        grid=(B, Tp // tt),
        in_specs=[
            pl.BlockSpec((None, tt, D), lambda b, i: (b, i, 0)),
            pl.BlockSpec((None, 1, D), lambda b, i: (b, 0, 0)),
            pl.BlockSpec((None, 1, D), lambda b, i: (b, 0, 0)),
        ],
        out_specs=pl.BlockSpec((None, tt, D), lambda b, i: (b, i, 0)),
        compiler_params=pltpu.CompilerParams(
            dimension_semantics=("parallel", "parallel")),
    )(xp, sc3, sh3)
    return out[:, :T, :]


# ----------------------------------------------------------------------------
# attention (heads batched per grid step, key-padding mask, softmax)
# ----------------------------------------------------------------------------

def _attn_kernel(q_ref, k_ref, v_ref, m_ref, o_ref, *, scale):
    q = q_ref[...]                                        # (hb, T, Dh) bf16
    k = k_ref[...]
    v = v_ref[...]
    s = jnp.einsum("htd,hsd->hts", q, k,
                   preferred_element_type=jnp.float32) * scale
    keymask = m_ref[...]                                  # (1, T)  {0,1}
    s = s + (1.0 - keymask) * (-1e30)                     # finite -> no NaN
    m = jnp.max(s, axis=-1, keepdims=True)
    p = jnp.exp(s - m)
    denom = jnp.sum(p, axis=-1, keepdims=True)
    p = p * pl.reciprocal(denom, approx=True)
    o = jnp.einsum("hts,hsd->htd", p.astype(v.dtype), v,
                   preferred_element_type=jnp.float32)
    o_ref[...] = o.astype(o_ref.dtype)


def pallas_attention(q, k, v, mask_f):
    """q,k,v: (B, H, T, Dh); mask_f: (B, T) float {0,1} key-padding mask."""
    B, H, T, Dh = q.shape
    hb = max(1, min(H, 128 // Dh)) if Dh < 128 else 1
    while H % hb:
        hb -= 1
    # keep the in-kernel (hb, T, T) score slab modest (v7x has 64 MiB VMEM)
    while hb > 1 and hb * T * T * 4 > 6 * 1024 * 1024:
        hb -= 1
        while H % hb:
            hb -= 1
    qf, kf, vf = (a.astype(jnp.bfloat16) for a in (q, k, v))
    m3 = mask_f.astype(jnp.float32).reshape(B, 1, T)
    return pl.pallas_call(
        partial(_attn_kernel, scale=1.0 / math.sqrt(Dh)),
        out_shape=jax.ShapeDtypeStruct((B, H, T, Dh), jnp.bfloat16),
        grid=(B, H // hb),
        in_specs=[
            pl.BlockSpec((None, hb, T, Dh), lambda b, h: (b, h, 0, 0)),
            pl.BlockSpec((None, hb, T, Dh), lambda b, h: (b, h, 0, 0)),
            pl.BlockSpec((None, hb, T, Dh), lambda b, h: (b, h, 0, 0)),
            pl.BlockSpec((None, 1, T), lambda b, h: (b, 0, 0)),
        ],
        out_specs=pl.BlockSpec((None, hb, T, Dh), lambda b, h: (b, h, 0, 0)),
        compiler_params=pltpu.CompilerParams(
            dimension_semantics=("parallel", "parallel")),
    )(qf, kf, vf, m3)


# ----------------------------------------------------------------------------
# grouped Conv1d(k=31, groups=16) + Mish  (ConvPositionEmbedding)
# ----------------------------------------------------------------------------

def _gconv_mish_kernel(x_ref, w_ref, b_ref, o_ref, acc_ref, *, T, K):
    acc_ref[...] = jnp.zeros_like(acc_ref)
    for k in range(K):                                      # 31-tap shift+acc
        acc_ref[...] += jnp.dot(x_ref[pl.ds(k, T), :], w_ref[k],
                                preferred_element_type=jnp.float32)
    y = acc_ref[...] + b_ref[...]
    y = y * jnp.tanh(jax.nn.softplus(y))                    # Mish
    o_ref[...] = y.astype(o_ref.dtype)


def make_conv_params(w, b, groups):
    """w: (D, D//groups, K) torch Conv1d weight.  Stored as (G, K, in_pg, out_pg)."""
    D, in_pg, K = w.shape
    G = groups
    out_pg = D // G
    wg = jnp.asarray(w, jnp.float32).reshape(G, out_pg, in_pg, K)
    wg = jnp.transpose(wg, (0, 3, 2, 1)).astype(jnp.bfloat16)   # (G, K, in_pg, out_pg)
    bg = jnp.asarray(b, jnp.float32).reshape(G, 1, out_pg)
    return {"w": wg, "b": bg, "groups": int(G), "ksize": int(K)}


def conv_pos_embedding(h, cp1, cp2):
    """Two grouped Conv1d(k=31, groups=16) + Mish each, channel-last layout."""
    def one(hin, cp):
        B, T, D = hin.shape
        G, K = cp["groups"], cp["ksize"]
        Cg = D // G
        pad = K // 2
        xg = hin.reshape(B, T, G, Cg).transpose(0, 2, 1, 3)           # (B,G,T,Cg)
        xg = jnp.pad(xg, ((0, 0), (0, 0), (pad, pad), (0, 0))).astype(jnp.bfloat16)
        out = pl.pallas_call(
            partial(_gconv_mish_kernel, T=T, K=K),
            out_shape=jax.ShapeDtypeStruct((B, G, T, Cg), jnp.bfloat16),
            grid=(B, G),
            in_specs=[
                pl.BlockSpec((None, None, T + K - 1, Cg), lambda b, g: (b, g, 0, 0)),
                pl.BlockSpec((None, K, Cg, Cg), lambda b, g: (g, 0, 0, 0)),
                pl.BlockSpec((None, 1, Cg), lambda b, g: (g, 0, 0)),
            ],
            out_specs=pl.BlockSpec((None, None, T, Cg), lambda b, g: (b, g, 0, 0)),
            scratch_shapes=[pltpu.VMEM((T, Cg), jnp.float32)],
            compiler_params=pltpu.CompilerParams(
                dimension_semantics=("parallel", "parallel")),
        )(xg, cp["w"], cp["b"])
        return out.transpose(0, 2, 1, 3).reshape(B, T, D)             # (B,T,D)

    return one(one(h, cp1), cp2)


# ----------------------------------------------------------------------------
# rotary embedding (interleaved, first dim_head channels, pre-head-split)
# ----------------------------------------------------------------------------

def apply_rope(t_arr, cos, sin, rot_dim):
    B, T, _ = t_arr.shape
    t_rot, t_un = t_arr[..., :rot_dim], t_arr[..., rot_dim:]
    pr = t_rot.astype(jnp.float32).reshape(B, T, rot_dim // 2, 2)
    rh = jnp.stack([-pr[..., 1], pr[..., 0]], axis=-1).reshape(B, T, rot_dim)
    t_new = t_rot.astype(jnp.float32) * cos + rh * sin
    return jnp.concatenate([t_new.astype(t_arr.dtype), t_un], axis=-1)


# ----------------------------------------------------------------------------
# parameters
# ----------------------------------------------------------------------------

def init_params(key, cfg):
    dim, heads, dh = cfg["dim"], cfg["heads"], cfg["dim_head"]
    inner = heads * dh
    ff_inner = int(dim * cfg["ff_mult"])
    in_dim = cfg["mel_dim"] + cfg["content_dim"] + cfg["pitch_dim"] + cfg["spk_dim"]
    groups, ksz = 16, 31
    keys = iter(jax.random.split(key, 512))

    def w(shape, scale=0.02):
        return jax.random.normal(next(keys), shape, jnp.float32) * scale

    def lin(n, k_):
        return make_linear_params(w((n, k_)), w((n,)))

    p = {
        "time1": lin(dim, 256),
        "time2": lin(dim, dim),
        "content_emb": w((cfg["content_nums"] + 1, cfg["content_dim"]), 1.0),
        "pitch_emb": w((cfg["pitch_nums"] + 1, cfg["pitch_dim"]), 1.0),
        "in_proj": lin(dim, in_dim),
        "conv1": make_conv_params(w((dim, dim // groups, ksz)), w((dim,)), groups),
        "conv2": make_conv_params(w((dim, dim // groups, ksz)), w((dim,)), groups),
        "skip": make_linear_params(w((dim, 2 * dim)), None),     # no bias
        "final": lin(2 * dim, dim),
        "out": lin(cfg["mel_dim"], dim),
        "blocks": [],
    }
    for _ in range(cfg["depth"]):
        qw, kw_, vw = w((inner, dim)), w((inner, dim)), w((inner, dim))
        qb, kb, vb = w((inner,)), w((inner,)), w((inner,))
        p["blocks"].append({
            "adaln": lin(6 * dim, dim),
            "qkv": make_linear_params(jnp.concatenate([qw, kw_, vw], axis=0),
                                      jnp.concatenate([qb, kb, vb], axis=0)),
            "o": lin(dim, inner),
            "ff1": lin(ff_inner, dim),
            "ff2": lin(dim, ff_inner),
        })
    return p


# ----------------------------------------------------------------------------
# DiT forward
# ----------------------------------------------------------------------------

def dit_forward(params, cfg, x, time, content, pitch, spk, mask, drop_cond=False):
    B, T, _ = x.shape
    dim, heads, dim_head = cfg["dim"], cfg["heads"], cfg["dim_head"]
    inner = heads * dim_head
    mask_f = mask.astype(jnp.float32)

    # --- TimestepEmbedding (sinusoid in glue, MLP in Pallas) ---
    if time.ndim == 0:
        time = jnp.repeat(time[None], B)
    half = 128                                                  # freq_embed_dim=256
    emb_f = math.log(10000.0) / (half - 1)
    sfreq = jnp.exp(jnp.arange(half, dtype=jnp.float32) * -emb_f)
    te = 1000.0 * time.astype(jnp.float32)[:, None] * sfreq[None, :]
    te = jnp.concatenate([jnp.sin(te), jnp.cos(te)], axis=-1)   # (B, 256)
    t = pallas_linear2(te, params["time1"], act="silu", out_dtype=jnp.float32)
    t = pallas_linear2(t, params["time2"], out_dtype=jnp.float32)      # (B, dim)
    silu_t = t * jax.nn.sigmoid(t)          # SiLU(t) feeding every AdaLN linear

    # --- content / pitch embeddings (plain XLA gathers) ---
    content_emb = params["content_emb"][content]                # (B, T, content_dim)
    pitch_emb = params["pitch_emb"][pitch]                      # (B, T, pitch_dim)

    # --- InputEmbedding ---
    spk_rep = jnp.broadcast_to(spk[:, None, :], (B, T, spk.shape[-1]))
    cond = jnp.concatenate([content_emb, pitch_emb, spk_rep], axis=-1)
    if drop_cond:
        cond = jnp.zeros_like(cond)
    h0 = pallas_linear3(jnp.concatenate([x, cond], axis=-1),
                        params["in_proj"], out_dtype=jnp.float32)       # (B,T,dim)
    h = conv_pos_embedding(h0, params["conv1"], params["conv2"]) + h0

    # --- rotary embedding tables (interleaved, rot_dim = dim_head) ---
    inv_freq = 1.0 / (10000.0 ** (jnp.arange(0, dim_head, 2, dtype=jnp.float32)
                                  / dim_head))
    tpos = jnp.arange(T, dtype=jnp.float32)
    f = tpos[:, None] * inv_freq[None, :]
    rope_freqs = jnp.stack([f, f], axis=-1).reshape(1, T, dim_head)
    rope_cos, rope_sin = jnp.cos(rope_freqs), jnp.sin(rope_freqs)

    residual = h

    for blk in params["blocks"]:
        # AdaLayerNormZero
        adaln = pallas_linear2(silu_t, blk["adaln"], out_dtype=jnp.float32)
        (shift_msa, scale_msa, gate_msa,
         shift_mlp, scale_mlp, gate_mlp) = jnp.split(adaln, 6, axis=-1)
        norm = pallas_modulated_layernorm(h, scale_msa, shift_msa)       # bf16

        # Attention (fused QKV; rope applied to first dim_head channels
        # before the head split, matching the reference)
        qkv = pallas_linear3(norm, blk["qkv"], out_dtype=jnp.bfloat16)   # (B,T,3*inner)
        q = apply_rope(qkv[..., :inner], rope_cos, rope_sin, dim_head)
        k = apply_rope(qkv[..., inner:2 * inner], rope_cos, rope_sin, dim_head)
        v = qkv[..., 2 * inner:]
        qh = q.reshape(B, T, heads, dim_head).transpose(0, 2, 1, 3)
        kh = k.reshape(B, T, heads, dim_head).transpose(0, 2, 1, 3)
        vh = v.reshape(B, T, heads, dim_head).transpose(0, 2, 1, 3)
        ao = pallas_attention(qh, kh, vh, mask_f)                        # (B,H,T,Dh)
        ao = ao.transpose(0, 2, 1, 3).reshape(B, T, inner)
        # h = h + gate_msa * (mask * o_proj(ao))  -- fused epilogue
        h = pallas_linear3(ao, blk["o"], gate=gate_msa, residual=h,
                           rowmask=mask_f, out_dtype=jnp.float32)

        # FeedForward with modulated LayerNorm; gate+residual fused into ff2
        norm2 = pallas_modulated_layernorm(h, scale_mlp, shift_mlp)
        ff = pallas_linear3(norm2, blk["ff1"], act="gelu_tanh",
                            out_dtype=jnp.bfloat16)
        h = pallas_linear3(ff, blk["ff2"], gate=gate_mlp, residual=h,
                           out_dtype=jnp.float32)

    # --- long skip connection ---
    h = pallas_linear3(jnp.concatenate([h, residual], axis=-1),
                       params["skip"], out_dtype=jnp.float32)

    # --- AdaLayerNormZero_Final + proj_out ---
    ada_f = pallas_linear2(silu_t, params["final"], out_dtype=jnp.float32)
    scale_f, shift_f = jnp.split(ada_f, 2, axis=-1)
    h = pallas_modulated_layernorm(h, scale_f, shift_f)
    out = pallas_linear3(h, params["out"], out_dtype=jnp.float32)        # (B,T,mel)
    return out * mask_f[:, :, None]


# ----------------------------------------------------------------------------
# Main
# ----------------------------------------------------------------------------

if __name__ == "__main__":
    cfg = dict(dim=64, depth=2, heads=2, dim_head=32, dropout=0.0, ff_mult=2,
               mel_dim=16, content_nums=32, content_dim=16,
               pitch_nums=32, pitch_dim=16, spk_dim=16, long_skip_connection=True)

    key = jax.random.PRNGKey(0)
    pkey, xkey, ckey, pkey2, skey = jax.random.split(key, 5)
    params = init_params(pkey, cfg)

    B, T = 2, 16
    x = jax.random.normal(xkey, (B, T, cfg["mel_dim"]), jnp.float32)
    content = jax.random.randint(ckey, (B, T), 0, cfg["content_nums"] + 1)
    pitch = jax.random.randint(pkey2, (B, T), 0, cfg["pitch_nums"] + 1)
    spk = jax.random.normal(skey, (B, cfg["spk_dim"]), jnp.float32)
    time = jnp.asarray(0.5, jnp.float32)                        # 0-dim timestep path
    mask = jnp.concatenate([jnp.ones((1, T), bool),
                            (jnp.arange(T)[None, :] < 12)], axis=0)

    out = dit_forward(params, cfg, x, time, content, pitch, spk, mask,
                      drop_cond=False)
    out = jax.block_until_ready(out)

    assert out.shape == (B, T, cfg["mel_dim"]), out.shape
    assert bool(jnp.all(jnp.isfinite(out)))
    # masked frames must be exactly zero (output * mask)
    assert bool(jnp.all(out[1, 12:, :] == 0.0))
    print("KERNEL_OK")
</pallas_src>

<mosaic_0001>
module attributes {stable_mosaic.version = 11 : i64} {
  func.func @_linear_kernel(%arg0: i32, %arg1: i32, %arg2: i32, %arg3: i32, %arg4: memref<1x8x256xf32, #tpu.memory_space<vmem>>, %arg5: memref<256x128xbf16, #tpu.memory_space<vmem>>, %arg6: memref<1x128xf32, #tpu.memory_space<vmem>>, %arg7: memref<1x8x128xf32, #tpu.memory_space<vmem>>, %arg8: memref<8x128xf32, #tpu.memory_space<vmem>>) attributes {dimension_semantics = [#tpu.dimension_semantics<parallel>, #tpu.dimension_semantics<parallel>, #tpu.dimension_semantics<parallel>, #tpu.dimension_semantics<arbitrary>], iteration_bounds = array<i64: 1, 1, 1, 1>, scalar_prefetch = 0 : i64, scratch_operands = 1 : i64, tpu.core_type = #tpu.core_type<tc>, window_params = [{transform_indices = @transform_0, window_bounds = array<i64: 1, 8, 256>}, {transform_indices = @transform_1, window_bounds = array<i64: 256, 128>}, {transform_indices = @transform_2, window_bounds = array<i64: 1, 128>}, {transform_indices = @transform_3, window_bounds = array<i64: 1, 8, 128>}]} {
    %c0_i32 = arith.constant 0 : i32
    %0 = arith.cmpi eq, %arg3, %c0_i32 : i32
    %1 = arith.extui %0 : i1 to i32
    %c0_i32_0 = arith.constant 0 : i32
    %2 = arith.cmpi ne, %1, %c0_i32_0 : i32
    scf.if %2 {
      %cst_11 = arith.constant 0.000000e+00 : f32
      %14 = vector.broadcast %cst_11 : f32 to vector<8x128xf32>
      %c0_12 = arith.constant 0 : index
      %c0_13 = arith.constant 0 : index
      %15 = vector.load %arg8[%c0_12, %c0_13] : memref<8x128xf32, #tpu.memory_space<vmem>>, vector<8x128xf32>
      tpu.vector_store %arg8[%c0_12, %c0_13], %14 {strides = array<i32>} : memref<8x128xf32, #tpu.memory_space<vmem>>, vector<8x128xf32>,
    } else {
    }
    %c0 = arith.constant 0 : index
    %c0_1 = arith.constant 0 : index
    %3 = vector.load %arg8[%c0, %c0_1] : memref<8x128xf32, #tpu.memory_space<vmem>>, vector<8x128xf32>
    %c0_2 = arith.constant 0 : index
    %c0_3 = arith.constant 0 : index
    %c0_4 = arith.constant 0 : index
    %4 = vector.load %arg4[%c0_2, %c0_3, %c0_4] : memref<1x8x256xf32, #tpu.memory_space<vmem>>, vector<1x8x256xf32>
    %5 = vector.shape_cast %4 : vector<1x8x256xf32> to vector<8x256xf32>
    %6 = arith.truncf %5 : vector<8x256xf32> to vector<8x256xbf16>
    %c0_5 = arith.constant 0 : index
    %c0_6 = arith.constant 0 : index
    %7 = vector.load %arg5[%c0_5, %c0_6] : memref<256x128xbf16, #tpu.memory_space<vmem>>, vector<256x128xbf16>
    %cst = arith.constant dense<0.000000e+00> : vector<8x128xf32>
    %8 = tpu.matmul %6, %7, %cst {dimension_numbers = #tpu.dot_dimension_numbers<[1], [0], [0], [1], [0, 0, 1, 1], [], []>} : vector<8x256xbf16>, vector<256x128xbf16>, vector<8x128xf32> -> vector<8x128xf32>
    %9 = arith.addf %3, %8 : vector<8x128xf32>
    %c0_7 = arith.constant 0 : index
    %c0_8 = arith.constant 0 : index
    %10 = vector.load %arg8[%c0_7, %c0_8] : memref<8x128xf32, #tpu.memory_space<vmem>>, vector<8x128xf32>
    tpu.vector_store %arg8[%c0_7, %c0_8], %9 {strides = array<i32>} : memref<8x128xf32, #tpu.memory_space<vmem>>, vector<8x128xf32>,
    %c0_i32_9 = arith.constant 0 : i32
    %11 = arith.cmpi eq, %arg3, %c0_i32_9 : i32
    %12 = arith.extui %11 : i1 to i32
    %c0_i32_10 = arith.constant 0 : i32
    %13 = arith.cmpi ne, %12, %c0_i32_10 : i32
    scf.if %13 {
      %c0_11 = arith.constant 0 : index
      %c0_12 = arith.constant 0 : index
      %14 = vector.load %arg8[%c0_11, %c0_12] : memref<8x128xf32, #tpu.memory_space<vmem>>, vector<8x128xf32>
      %c0_13 = arith.constant 0 : index
      %c0_14 = arith.constant 0 : index
      %15 = vector.load %arg6[%c0_13, %c0_14] : memref<1x128xf32, #tpu.memory_space<vmem>>, vector<1x128xf32>
      %16 = vector.broadcast %15 : vector<1x128xf32> to vector<8x128xf32>
      %17 = arith.addf %14, %16 : vector<8x128xf32>
      %18 = arith.negf %17 : vector<8x128xf32>
      %19 = math.exp %18 : vector<8x128xf32>
      %cst_15 = arith.constant 1.000000e+00 : f32
      %20 = vector.broadcast %cst_15 : f32 to vector<8x128xf32>
      %21 = arith.addf %20, %19 : vector<8x128xf32>
      %22 = arith.divf %20, %21 : vector<8x128xf32>
      %23 = arith.mulf %17, %22 : vector<8x128xf32>
      %c0_16 = arith.constant 0 : index
      %c0_17 = arith.constant 0 : index
      %c0_18 = arith.constant 0 : index
      %24 = vector.load %arg7[%c0_16, %c0_17, %c0_18] : memref<1x8x128xf32, #tpu.memory_space<vmem>>, vector<1x8x128xf32>
      %25 = vector.shape_cast %24 : vector<1x8x128xf32> to vector<8x128xf32>
      %26 = vector.shape_cast %23 : vector<8x128xf32> to vector<1x8x128xf32>
      tpu.vector_store %arg7[%c0_16, %c0_17, %c0_18], %26 {strides = array<i32>} : memref<1x8x128xf32, #tpu.memory_space<vmem>>, vector<1x8x128xf32>,
    } else {
    }
    return
  }
  func.func @transform_0(%arg0: i32, %arg1: i32, %arg2: i32, %arg3: i32) -> (i32, i32, i32) {
    %c0_i32 = arith.constant 0 : i32
    return %arg0, %arg1, %arg3 : i32, i32, i32
  }
  func.func @transform_1(%arg0: i32, %arg1: i32, %arg2: i32, %arg3: i32) -> (i32, i32) {
    %c0_i32 = arith.constant 0 : i32
    return %arg3, %arg2 : i32, i32
  }
  func.func @transform_2(%arg0: i32, %arg1: i32, %arg2: i32, %arg3: i32) -> (i32, i32) {
    %c0_i32 = arith.constant 0 : i32
    %c0_i32_0 = arith.constant 0 : i32
    return %c0_i32, %arg2 : i32, i32
  }
  func.func @transform_3(%arg0: i32, %arg1: i32, %arg2: i32, %arg3: i32) -> (i32, i32, i32) {
    %c0_i32 = arith.constant 0 : i32
    return %arg0, %arg1, %arg2 : i32, i32, i32
  }
}

</mosaic_0001>

<bundles_post_ra>
// kernel: tpu_custom_call.1
= control target key start
LH: loop header
LB: loop body
LE: loop exit
PB: predicated region body
PF: predicated region fallthrough
CT: control target
= control target key end

     0   :  { %8 = vsyncpa [#allocation4], 0  ;;  %s426_s0 = inlined_call_operand.hbm [shape: f32[1,8,256], index: 0, kind: input, shape index: {}]   ;;  %s427_s1 = inlined_call_operand.hbm [shape: bf16[256,128], index: 1, kind: input, shape index: {}]   ;;  %s428_s2 = inlined_call_operand.vmem [shape: f32[1,128], index: 2, kind: input, shape index: {}]   ;;  %s429_s3 = inlined_call_operand.hbm [shape: f32[1,8,128], index: 3, kind: output, shape index: {}]  }
   0x1   :  { %9 = vsyncpa [#allocation7], 0 }
   0x2   :  { %10 = vsyncpa [#allocation5], 0  ;;  %s389_s12 = smov [#allocation3]   ;;  %s390_s14 = smov [#allocation6]  }
   0x3   :  { %s17_s13 = sshll.u32 %s389_s12, 4  ;;  %s26_s15 = sshll.u32 %s390_s14, 4  ;;  %s18_s13 = int_to_ptr.vmem [resolvable:$true] %s17_s13  ;;  %s27_s15 = int_to_ptr.vmem [resolvable:$true] %s26_s15 }
   0x4   :  { %s331_s16 = scalar_lea.vmem %s18_s13, 256  ;;  %p336_p1 = scmp.lt.s32.totalorder %s18_s13, %s18_s13 }
   0x5   :  { %p332_p0 = scmp.ne.s32.totalorder %s18_s13, %s331_s16  ;;  %p337_p2 = scmp.lt.s32.totalorder %s331_s16, %s331_s16 }
   0x7   :  { %p338_p3 = por %p337_p2, %p336_p1 }
   0x9   :  { %p339_p4 = pnand %p338_p3, %p332_p0 }
   0xb   :  { %342 = shalt.err (!%p339_p4)
}
   0xc   :  { %20 = dma.hbm_to_vmem [thread:$0]  %s426_s0, 256, %s18_s13, [#allocation4]  }
   0xd   :  { %s351_s19 = scalar_lea.vmem %s27_s15, 2048  ;;  %p356_p6 = scmp.lt.s32.totalorder %s27_s15, %s27_s15 }
   0xe   :  { %p352_p5 = scmp.ne.s32.totalorder %s27_s15, %s351_s19  ;;  %p357_p7 = scmp.lt.s32.totalorder %s351_s19, %s351_s19 }
  0x10   :  { %p358_p8 = por %p357_p7, %p356_p6 }
  0x12   :  { %p359_p9 = pnand %p358_p8, %p352_p5 }
  0x14   :  { %362 = shalt.err (!%p359_p9)
}
  0x15   :  { %s391_s20 = smov 64   ;;  %s392_s21 = smov 4  }
  0x16   :  { %32 = dma.hbm_to_vmem [thread:$0]  %s427_s1, 2048, %s27_s15, [#allocation7], %s391_s20, %s391_s20, %s392_s21  }
  0x17   :  { %383 = dma.done.wait [#allocation4], 256  }
  0x18   :  { %384 = vsyncadd [#allocation4], 4294967040 }
  0x19   :  { %385 = dma.done.wait [#allocation7], 2048  }
  0x1a   :  { %386 = vsyncadd [#allocation7], 4294965248  ;;  %v303_v0 = vld [vmem:[#allocation6 + $0x78] sm:$0xff]   ;;  %v305_v2 = vld [vmem:[#allocation6 + $0x70] sm:$0xff]   ;;  %s393_s24 = smov [#allocation8]  }
  0x1b   :  { %v304_v1 = vld [vmem:[#allocation6 + $0x38] sm:$0xff]   ;;  %276 = vmatprep.subr.bf16.mxu0 %v303_v0  ;;  %v306_v3 = vld [vmem:[#allocation6 + $0x30] sm:$0xff]   ;;  %v307_v4 = vld [vmem:[#allocation6 + $0x68] sm:$0xff]   ;;  %s248_s25 = sshll.u32 %s393_s24, 4  ;;  %s249_s25 = int_to_ptr.vmem [resolvable:$true] %s248_s25 }
  0x1c   :  { %277 = vmatpush3.bf16.msra.mxu0 %v304_v1  ;;  %v308_v5 = vld [vmem:[#allocation6 + $0x28] sm:$0xff]   ;;  %v309_v6 = vld [vmem:[#allocation6 + $0x60] sm:$0xff]   ;;  %v311_v8 = vld [vmem:[#allocation6 + $0x58] sm:$0xff]   ;;  %s363_s26 = scalar_lea.vmem %s249_s25, 128  ;;  %p368_p11 = scmp.lt.s32.totalorder %s249_s25, %s249_s25 }
  0x1d   :  { %278 = vmatprep.subr.bf16.mxu0 %v305_v2  ;;  %v310_v7 = vld [vmem:[#allocation6 + $0x20] sm:$0xff]   ;;  %v312_v9 = vld [vmem:[#allocation6 + $0x18] sm:$0xff]   ;;  %v313_v10 = vld [vmem:[#allocation6 + $0x50] sm:$0xff]   ;;  %p364_p10 = scmp.ne.s32.totalorder %s249_s25, %s363_s26  ;;  %p369_p12 = scmp.lt.s32.totalorder %s363_s26, %s363_s26 }
  0x1e   :  { %v49_v11 = vld [vmem:[#allocation3 + $0x8] sm:$0xff]  ;;  %v314_v13 = vld [vmem:[#allocation6 + $0x10] sm:$0xff]   ;;  %v315_v14 = vld [vmem:[#allocation6 + $0x48] sm:$0xff]  }
  0x1f   :  { %v51_v12 = vpack.c.bf16 %v49_v11, %v49_v11  ;;  %v316_v15 = vld [vmem:[#allocation6 + $0x8] sm:$0xff]   ;;  %v317_v16 = vld [vmem:[#allocation6 + $0x40] sm:$0xff]   ;;  %v48_v18 = vld [vmem:[#allocation3] sm:$0xff]  ;;  %p370_p13 = por %p369_p12, %p368_p11 }
  0x20   :  { %279 = vmatpush3.bf16.msra.mxu0 %v306_v3  ;;  %v318_v17 = vld [vmem:[#allocation6] sm:$0xff]   ;;  %v50_v19 = vpack.c.bf16 %v48_v18, %v48_v18  ;;  %v274_v22 = vld [vmem:[%s428_s2] ss:$0 sm:$0xff] }
  0x21   :  { %280 = vmatprep.subr.bf16.mxu0 %v307_v4  ;;  %212 = vmatprep.mubr.bf16.mxu0 %v51_v12  ;;  %p371_p0 = pnand %p370_p13, %p364_p10 }
  0x24   :  { %281 = vmatpush3.bf16.msra.mxu0 %v308_v5 }
  0x25   :  { %282 = vmatprep.subr.bf16.mxu0 %v309_v6 }
  0x28   :  { %283 = vmatpush3.bf16.msra.mxu0 %v310_v7 }
  0x29   :  { %284 = vmatprep.subr.bf16.mxu0 %v311_v8 }
  0x2c   :  { %285 = vmatpush3.bf16.msra.mxu0 %v312_v9 }
  0x2d   :  { %286 = vmatprep.subr.bf16.mxu0 %v313_v10 }
  0x30   :  { %287 = vmatpush3.bf16.msra.mxu0 %v314_v13 }
  0x31   :  { %288 = vmatprep.subr.bf16.mxu0 %v315_v14 }
  0x34   :  { %289 = vmatpush3.bf16.msra.mxu0 %v316_v15 }
  0x35   :  { %290 = vmatprep.subr.bf16.mxu0 %v317_v16 }
  0x38   :  { %291 = vmatpush3.bf16.msra.mxu0 %v318_v17 }
  0x3b   :  { %213 = vmatmul.mubr.bf16.vlgmr.msra.gmra.mxu0 %v50_v19 }
  0xfb   :  { %v292_v20 = vpop.f32.mrf.mxu0 }
  0xfd   :  { %v293_v21 = vpop.f32.mrf.mxu0 }
  0xfe   :  { %v294_v23 = vadd.f32 %v293_v21, %v292_v20 }
  0xff   :  { %v295_v24 = vpop.f32.mrf.mxu0 }
 0x100   :  { %v233_v25 = vadd.f32 %v294_v23, %v274_v22 }
 0x101   :  { %v296_v26 = vpop.f32.mrf.mxu0 }
 0x102   :  { %v275_v27 = vmul.f32 -1.442695, %v233_v25 }
 0x104   :  { %319 = vpow2.f32 %v275_v27 }
 0x111   :  { %v320_v28 = vpop.eup %319 }
 0x112   :  { %v237_v29 = vadd.f32 1.0, %v320_v28 }
 0x114   :  { %321 = vrcp.f32 %v237_v29 }
 0x121   :  { %v322_v30 = vpop.eup %321 }
 0x122   :  { %v240_v31 = vmul.f32 %v322_v30, %v233_v25 }
 0x124   :  { %241 = vst [vmem:[#allocation8] sm:$0xff] %v240_v31 }
 0x125   :  { %374 = shalt.err (!%p371_p0)
}
 0x126   :  { %251 = dma.vmem_to_hbm [thread:$0]  %s249_s25, 128, %s429_s3, [#allocation5]  }
 0x127   :  { %387 = dma.done.wait [#allocation5], 128  }
 0x128   :  { %388 = vsyncadd [#allocation5], 4294967168 }
 0x129   :  { %255 = vsyncpa [#allocation4], 1 }
 0x12a   :  { %256 = vsyncpa [#allocation7], 1 }
 0x12b   :  { %257 = vsyncpa [#allocation5], 1 }

</bundles_post_ra>
